<compile_context>
chip_gen: v6e
topology: v6e:2x2x1
jax: 0.10.0
libtpu: 0.0.40
codegen_flags: <defaults>
</compile_context>

<pallas_src>
import functools

import jax
import jax.numpy as jnp
from jax.experimental import pallas as pl
from jax.experimental.pallas import tpu as pltpu


def _round_up(n, m):
    return ((n + m - 1) // m) * m


def _choose_batch_tile(B, block_b, min_steps=2):
    """Pick a batch tile: multiple of 8, and >=min_steps grid steps when the
    batch is splittable (keeps both v7x TensorCores busy on the parallel axis)."""
    block_b = max(8, _round_up(block_b, 8))
    tb = min(block_b, _round_up(B, 8))
    if min_steps > 1 and B > 8:
        tb = min(tb, max(8, _round_up(-(-B // min_steps), 8)))
    b_pad = _round_up(B, tb)
    return tb, b_pad


def energy_kernel(x_ref, y_ref, w_ref, c1w_ref, c1b_ref, c2w_ref, out_ref):
    """One batch tile of the EnergyNet forward, fully VMEM resident.

    x_ref   : (TB, F)   input features          (f32 or bf16)
    y_ref   : (TB, L)   labels                  (f32 or bf16)
    w_ref   : (F, L)    linear_wt weight [in, out]
    c1w_ref : (L, P)    C1 weight [in, out]
    c1b_ref : (1, P)    C1 bias (f32)
    c2w_ref : (1, P)    c2 weight as a row (f32)
    out_ref : (TB, L+1) lanes [0, L): feat_probs ; lane L: e_global  (f32)
    """
    # negative_logits = linear_wt(x)                        -> (TB, L), f32 acc
    logits = jnp.dot(x_ref[...], w_ref[...], preferred_element_type=jnp.float32)

    # All elementwise math in f32 (v5e has no bf16 VPU/EUP).
    y = y_ref[...].astype(jnp.float32)

    # feat_probs = sigmoid(-negative_logits)                -> (TB, L)
    probs = jax.nn.sigmoid(-logits)

    # e_local = sum(negative_logits * y, dim=1)             -> (TB, 1)
    e_local = jnp.sum(logits * y, axis=1, keepdims=True)

    # e_label = c2(softplus(C1(y)))                         -> (TB, 1)
    h = jnp.dot(y_ref[...], c1w_ref[...], preferred_element_type=jnp.float32)
    h = h + c1b_ref[...].astype(jnp.float32)
    sp = jnp.logaddexp(h, 0.0)  # numerically stable softplus (matches nn.Softplus)
    # c2 is only 16 wide -> VPU multiply + row reduce instead of a (16,1) MXU dot.
    e_label = jnp.sum(sp * c2w_ref[...].astype(jnp.float32), axis=1, keepdims=True)

    # e_global = e_label + e_local                          -> (TB, 1)
    e_global = e_label + e_local

    # Packed, lane-dense-ish store: feat_probs in lanes [0, L), e_global in lane L.
    L = probs.shape[1]
    out_ref[:, :L] = probs.astype(out_ref.dtype)
    out_ref[:, L:] = e_global.astype(out_ref.dtype)


@functools.partial(jax.jit, static_argnames=("block_b", "use_bf16_inputs"))
def energy_net(x, y, w, c1_w, c1_b, c2_w, *, block_b=1024, use_bf16_inputs=False):
    """EnergyNet forward.  Weights are stored [in, out] (pre-transposed).

    Returns (e_global: (B,), feat_probs: (B, L))."""
    B, F = x.shape
    L = w.shape[1]
    P = c1_w.shape[1]
    OUT_W = L + 1  # +1 lane for packed e_global

    TB, B_pad = _choose_batch_tile(B, block_b)

    # Optional bf16 input streams (v6e/v7x bandwidth win); accumulators stay f32.
    in_dtype = jnp.bfloat16 if use_bf16_inputs else x.dtype
    x_in = x.astype(in_dtype)
    y_in = y.astype(in_dtype)
    w_in = w.astype(in_dtype)
    c1w_in = c1_w.astype(in_dtype)
    c1b_in = c1_b.reshape(1, P).astype(jnp.float32)
    c2w_in = c2_w.reshape(1, P).astype(jnp.float32)  # row layout for VPU reduce

    # Pad only the batch, and only if the tile does not divide it.
    if B_pad != B:
        x_in = jnp.pad(x_in, ((0, B_pad - B), (0, 0)))
        y_in = jnp.pad(y_in, ((0, B_pad - B), (0, 0)))

    itemsize_in = jnp.dtype(in_dtype).itemsize
    cost = pl.CostEstimate(
        flops=2 * B_pad * (F * L + L * P) + B_pad * (2 * L + 3 * P + 1),
        transcendentals=B_pad * (L + P),
        bytes_accessed=(
            (B_pad * F + B_pad * L) * itemsize_in
            + (F * L + L * P) * itemsize_in
            + 2 * P * 4
            + B_pad * OUT_W * 4
        ),
    )

    out = pl.pallas_call(
        energy_kernel,
        out_shape=jax.ShapeDtypeStruct((B_pad, OUT_W), jnp.float32),
        grid=(B_pad // TB,),
        in_specs=[
            pl.BlockSpec((TB, F), lambda i: (i, 0)),   # x batch tile (full lane dim)
            pl.BlockSpec((TB, L), lambda i: (i, 0)),   # y batch tile (full lane dim)
            pl.BlockSpec((F, L), lambda i: (0, 0)),    # linear_wt w (VMEM resident)
            pl.BlockSpec((L, P), lambda i: (0, 0)),    # C1 w        (VMEM resident)
            pl.BlockSpec((1, P), lambda i: (0, 0)),    # C1 b        (VMEM resident)
            pl.BlockSpec((1, P), lambda i: (0, 0)),    # c2 w row    (VMEM resident)
        ],
        out_specs=pl.BlockSpec((TB, OUT_W), lambda i: (i, 0)),
        compiler_params=pltpu.CompilerParams(
            dimension_semantics=("parallel",),         # shards across v7x's 2 TCs
        ),
        cost_estimate=cost,
    )(x_in, y_in, w_in, c1w_in, c1b_in, c2w_in)

    feat_probs = out[:B, :L]
    e_global = out[:B, L]
    return e_global, feat_probs


def energy_net_reference(x, y, w, c1_w, c1_b, c2_w):
    """Pure-JAX reference mirroring the PyTorch forward."""
    logits = x @ w
    feat_probs = jax.nn.sigmoid(-logits)
    e_local = jnp.sum(logits * y, axis=1)
    e_label = jax.nn.softplus(y @ c1_w + c1_b) @ c2_w
    e_global = e_label.reshape(-1) + e_local
    return e_global, feat_probs


if __name__ == "__main__":
    # Module dims: feature_dim=150 (hardcoded nn.Linear(150, ...)),
    # label_dim=159, num_pairwise=16.  Small batch that still exercises a
    # multi-step "parallel" batch grid (2 tiles of 32 rows).
    B, F, L, P = 64, 150, 159, 16

    key = jax.random.PRNGKey(0)
    kx, ky, kw, kc1w, kc1b, kc2w = jax.random.split(key, 6)

    x = jax.random.normal(kx, (B, F), dtype=jnp.float32)
    y = jax.random.uniform(ky, (B, L), dtype=jnp.float32)   # label / prob-like

    # Deterministic synthetic parameters (stored as [in, out]).
    w    = jax.random.normal(kw,   (F, L), dtype=jnp.float32) * 0.05
    c1_w = jax.random.normal(kc1w, (L, P), dtype=jnp.float32) * 0.05
    c1_b = jax.random.normal(kc1b, (P,),   dtype=jnp.float32) * 0.05
    c2_w = jax.random.normal(kc2w, (P, 1), dtype=jnp.float32) * 0.05

    e_global, feat_probs = energy_net(x, y, w, c1_w, c1_b, c2_w)
    jax.block_until_ready((e_global, feat_probs))

    # Sanity check against the plain-JAX reference (f32 path -> tight tolerance).
    e_ref, p_ref = energy_net_reference(x, y, w, c1_w, c1_b, c2_w)
    assert e_global.shape == (B,) and feat_probs.shape == (B, L)
    assert jnp.allclose(e_global, e_ref, atol=2e-4, rtol=2e-4)
    assert jnp.allclose(feat_probs, p_ref, atol=2e-5, rtol=2e-5)

    print("KERNEL_OK")
</pallas_src>

<mosaic_0001>
module attributes {stable_mosaic.version = 11 : i64} {
  func.func @energy_kernel(%arg0: i32, %arg1: memref<32x150xf32, #tpu.memory_space<vmem>>, %arg2: memref<32x159xf32, #tpu.memory_space<vmem>>, %arg3: memref<150x159xf32, #tpu.memory_space<vmem>>, %arg4: memref<159x16xf32, #tpu.memory_space<vmem>>, %arg5: memref<1x16xf32, #tpu.memory_space<vmem>>, %arg6: memref<1x16xf32, #tpu.memory_space<vmem>>, %arg7: memref<32x160xf32, #tpu.memory_space<vmem>>) attributes {dimension_semantics = [#tpu.dimension_semantics<parallel>], iteration_bounds = array<i64: 2>, scalar_prefetch = 0 : i64, scratch_operands = 0 : i64, tpu.core_type = #tpu.core_type<tc>, window_params = [{transform_indices = @transform_0, window_bounds = array<i64: 32, 150>}, {transform_indices = @transform_1, window_bounds = array<i64: 32, 159>}, {pipeline_mode = #tpu.pipeline_mode<synchronous>, transform_indices = @transform_2, window_bounds = array<i64: 150, 159>}, {pipeline_mode = #tpu.pipeline_mode<synchronous>, transform_indices = @transform_3, window_bounds = array<i64: 159, 16>}, {pipeline_mode = #tpu.pipeline_mode<synchronous>, transform_indices = @transform_4, window_bounds = array<i64: 1, 16>}, {pipeline_mode = #tpu.pipeline_mode<synchronous>, transform_indices = @transform_5, window_bounds = array<i64: 1, 16>}, {transform_indices = @transform_6, window_bounds = array<i64: 32, 160>}]} {
    %c0 = arith.constant 0 : index
    %c0_0 = arith.constant 0 : index
    %0 = vector.load %arg1[%c0, %c0_0] : memref<32x150xf32, #tpu.memory_space<vmem>>, vector<32x150xf32>
    %c0_1 = arith.constant 0 : index
    %c0_2 = arith.constant 0 : index
    %1 = vector.load %arg3[%c0_1, %c0_2] : memref<150x159xf32, #tpu.memory_space<vmem>>, vector<150x159xf32>
    %cst = arith.constant dense<0.000000e+00> : vector<32x159xf32>
    %2 = tpu.matmul %0, %1, %cst {dimension_numbers = #tpu.dot_dimension_numbers<[1], [0], [0], [1], [0, 0, 1, 1], [], []>} : vector<32x150xf32>, vector<150x159xf32>, vector<32x159xf32> -> vector<32x159xf32>
    %c0_3 = arith.constant 0 : index
    %c0_4 = arith.constant 0 : index
    %3 = vector.load %arg2[%c0_3, %c0_4] : memref<32x159xf32, #tpu.memory_space<vmem>>, vector<32x159xf32>
    %cst_5 = arith.constant 0.000000e+00 : f32
    %4 = vector.broadcast %cst_5 : f32 to vector<32x159xf32>
    %5 = arith.subf %4, %2 : vector<32x159xf32>
    %6 = arith.negf %5 : vector<32x159xf32>
    %7 = math.exp %6 : vector<32x159xf32>
    %cst_6 = arith.constant 1.000000e+00 : f32
    %8 = vector.broadcast %cst_6 : f32 to vector<32x159xf32>
    %9 = arith.addf %8, %7 : vector<32x159xf32>
    %10 = arith.divf %8, %9 : vector<32x159xf32>
    %11 = arith.mulf %2, %3 : vector<32x159xf32>
    %cst_7 = arith.constant dense<0.000000e+00> : vector<32xf32>
    %12 = vector.multi_reduction <add>, %11, %cst_7 [1] : vector<32x159xf32> to vector<32xf32>
    %13 = vector.shape_cast %12 : vector<32xf32> to vector<32x1xf32>
    %c0_8 = arith.constant 0 : index
    %c0_9 = arith.constant 0 : index
    %14 = vector.load %arg2[%c0_8, %c0_9] : memref<32x159xf32, #tpu.memory_space<vmem>>, vector<32x159xf32>
    %c0_10 = arith.constant 0 : index
    %c0_11 = arith.constant 0 : index
    %15 = vector.load %arg4[%c0_10, %c0_11] : memref<159x16xf32, #tpu.memory_space<vmem>>, vector<159x16xf32>
    %cst_12 = arith.constant dense<0.000000e+00> : vector<32x16xf32>
    %16 = tpu.matmul %14, %15, %cst_12 {dimension_numbers = #tpu.dot_dimension_numbers<[1], [0], [0], [1], [0, 0, 1, 1], [], []>} : vector<32x159xf32>, vector<159x16xf32>, vector<32x16xf32> -> vector<32x16xf32>
    %c0_13 = arith.constant 0 : index
    %c0_14 = arith.constant 0 : index
    %17 = vector.load %arg5[%c0_13, %c0_14] : memref<1x16xf32, #tpu.memory_space<vmem>>, vector<1x16xf32>
    %18 = vector.broadcast %17 : vector<1x16xf32> to vector<32x16xf32>
    %19 = arith.addf %16, %18 : vector<32x16xf32>
    %cst_15 = arith.constant 0.000000e+00 : f32
    %20 = vector.broadcast %cst_15 : f32 to vector<32x16xf32>
    %21 = arith.maximumf %19, %20 : vector<32x16xf32>
    %22 = vector.broadcast %cst_15 : f32 to vector<32x16xf32>
    %23 = arith.subf %19, %22 : vector<32x16xf32>
    %24 = arith.cmpf one, %23, %23 : vector<32x16xf32>
    %25 = vector.broadcast %cst_15 : f32 to vector<32x16xf32>
    %26 = arith.addf %19, %25 : vector<32x16xf32>
    %27 = math.absf %23 : vector<32x16xf32>
    %cst_16 = arith.constant 0.000000e+00 : f32
    %28 = vector.broadcast %cst_16 : f32 to vector<32x16xf32>
    %29 = arith.subf %28, %27 : vector<32x16xf32>
    %30 = math.exp %29 : vector<32x16xf32>
    %31 = math.log1p %30 : vector<32x16xf32>
    %32 = arith.addf %21, %31 : vector<32x16xf32>
    %33 = arith.select %24, %26, %32 : vector<32x16xi1>, vector<32x16xf32>
    %c0_17 = arith.constant 0 : index
    %c0_18 = arith.constant 0 : index
    %34 = vector.load %arg6[%c0_17, %c0_18] : memref<1x16xf32, #tpu.memory_space<vmem>>, vector<1x16xf32>
    %35 = vector.broadcast %34 : vector<1x16xf32> to vector<32x16xf32>
    %36 = arith.mulf %33, %35 : vector<32x16xf32>
    %cst_19 = arith.constant dense<0.000000e+00> : vector<32xf32>
    %37 = vector.multi_reduction <add>, %36, %cst_19 [1] : vector<32x16xf32> to vector<32xf32>
    %38 = vector.shape_cast %37 : vector<32xf32> to vector<32x1xf32>
    %39 = arith.addf %38, %13 : vector<32x1xf32>
    %c0_20 = arith.constant 0 : index
    %c0_21 = arith.constant 0 : index
    %40 = vector.load %arg7[%c0_20, %c0_21] : memref<32x160xf32, #tpu.memory_space<vmem>>, vector<32x159xf32>
    tpu.vector_store %arg7[%c0_20, %c0_21], %10 {strides = array<i32>} : memref<32x160xf32, #tpu.memory_space<vmem>>, vector<32x159xf32>,
    %c0_22 = arith.constant 0 : index
    %c159 = arith.constant 159 : index
    %41 = vector.load %arg7[%c0_22, %c159] : memref<32x160xf32, #tpu.memory_space<vmem>>, vector<32x1xf32>
    tpu.vector_store %arg7[%c0_22, %c159], %39 {strides = array<i32>} : memref<32x160xf32, #tpu.memory_space<vmem>>, vector<32x1xf32>,
    return
  }
  func.func @transform_0(%arg0: i32) -> (i32, i32) {
    %c0_i32 = arith.constant 0 : i32
    %c0_i32_0 = arith.constant 0 : i32
    return %arg0, %c0_i32 : i32, i32
  }
  func.func @transform_1(%arg0: i32) -> (i32, i32) {
    %c0_i32 = arith.constant 0 : i32
    %c0_i32_0 = arith.constant 0 : i32
    return %arg0, %c0_i32 : i32, i32
  }
  func.func @transform_2(%arg0: i32) -> (i32, i32) {
    %c0_i32 = arith.constant 0 : i32
    %c0_i32_0 = arith.constant 0 : i32
    %c0_i32_1 = arith.constant 0 : i32
    return %c0_i32, %c0_i32_0 : i32, i32
  }
  func.func @transform_3(%arg0: i32) -> (i32, i32) {
    %c0_i32 = arith.constant 0 : i32
    %c0_i32_0 = arith.constant 0 : i32
    %c0_i32_1 = arith.constant 0 : i32
    return %c0_i32, %c0_i32_0 : i32, i32
  }
  func.func @transform_4(%arg0: i32) -> (i32, i32) {
    %c0_i32 = arith.constant 0 : i32
    %c0_i32_0 = arith.constant 0 : i32
    %c0_i32_1 = arith.constant 0 : i32
    return %c0_i32, %c0_i32_0 : i32, i32
  }
  func.func @transform_5(%arg0: i32) -> (i32, i32) {
    %c0_i32 = arith.constant 0 : i32
    %c0_i32_0 = arith.constant 0 : i32
    %c0_i32_1 = arith.constant 0 : i32
    return %c0_i32, %c0_i32_0 : i32, i32
  }
  func.func @transform_6(%arg0: i32) -> (i32, i32) {
    %c0_i32 = arith.constant 0 : i32
    %c0_i32_0 = arith.constant 0 : i32
    return %arg0, %c0_i32 : i32, i32
  }
}

</mosaic_0001>

<bundles_post_ra>
// kernel: energy_net.1
= control target key start
LH: loop header
LB: loop body
LE: loop exit
PB: predicated region body
PF: predicated region fallthrough
CT: control target
= control target key end

     0   :  { %11 = vsyncpa [#allocation3], 0  ;;  %s1543_s0 = inlined_call_operand.vmem [shape: f32[64,150], index: 0, kind: input, shape index: {}]   ;;  %s1544_s1 = inlined_call_operand.hbm [shape: f32[64,159], index: 1, kind: input, shape index: {}]   ;;  %s1545_s2 = inlined_call_operand.hbm [shape: f32[150,159], index: 2, kind: input, shape index: {}]   ;;  %s1546_s3 = inlined_call_operand.vmem [shape: f32[159,16], index: 3, kind: input, shape index: {}]   ;;  %s1547_s4 = inlined_call_operand.vmem [shape: f32[1,16], index: 4, kind: input, shape index: {}]   ;;  %s1548_s5 = inlined_call_operand.vmem [shape: f32[1,16], index: 5, kind: input, shape index: {}]   ;;  %s1549_s6 = inlined_call_operand.vmem [shape: f32[64,160], index: 6, kind: output, shape index: {}]  }
   0x1   :  { %13 = vsyncpa [#allocation3 + $0x1], 0 }
   0x2   :  { %14 = vsyncpa [#allocation5], 0  ;;  %s1173_s21 = smov 0   ;;  %s1175_s22 = smov 0  }
   0x3   :  { %s1177_s23 = smov 0   ;;  %s1179_s24 = smov 0  }
   0x4 LB: > { %s893_s25 = sadd.s32 4294967295, %s1131_s24   ;;  %p66_p0 = scmp.ne.s32.totalorder %s1123_s22, %s1119_s21  ;;  %s1131_s24 = sphi %s1179_s24, %s1565_s24   ;;  %s1127_s23 = sphi %s1177_s23, %s1564_s23   ;;  %s1123_s22 = sphi %s1175_s22, %s1563_s22   ;;  %s1119_s21 = sphi %s1173_s21, %s1562_s21  }
   0x5   : > { %p1195_p1 = scmp.eq.s32.totalorder %s893_s25, 0  ;;  %p895_p2 = scmp.ge.s32.totalorder %s1131_s24, 1 }
   0x6   : > { %p187_p3 = scmp.lt.s32.totalorder %s1131_s24, 3  ;;  %s1133_s29 = smov [#allocation4]  }
   0x7   : > { %s1554_s26 = scalar_select %p1195_p1, 1, 0 }
   0x8   : > { %p1203_p4 = por %p1195_p1, %p66_p0  ;;  %p1207_p5 = pnand %p895_p2, %p187_p3 }
   0x9   : > { %s199_s30 = sshll.u32 %s1133_s29, 4  ;;  %s1220_s8 = sadd.s32 1, %s1131_s24   ;;  %s200_s30 = int_to_ptr.vmem [resolvable:$true] %s199_s30 }
   0xa   : > { %s1555_s27 = scalar_select %p1203_p4, 1, 0 }
   0xb   : > { %s1556_s28 = scalar_select %p1207_p5, 1, 0 }
   0xc   : > { %p944_p6 = pneg %p1207_p5  ;;  %s53_s9 = sadd.s32 1, %s1127_s23 }
   0xd   : > { %s50_s10 = ssub.s32 %s1131_s24, %s1220_s8  ;;  %s1050_s11 = scalar_lea.vmem %s200_s30, 4864 }
   0xe   : > { %p1215_p7 = pnand %p944_p6, %p1195_p1  ;;  %p1051_p9 = scmp.ne.s32.totalorder %s200_s30, %s1050_s11 }
   0xf   : > { %p1058_p12 = scmp.lt.s32.totalorder %s200_s30, %s200_s30  ;;  %p1059_p13 = scmp.lt.s32.totalorder %s1050_s11, %s1050_s11 }
  0x10   : > { %p1041_p8 = pneg %p1215_p7 }
  0x11   : > { %p1060_p0 = por %p1059_p13, %p1058_p12 }
  0x12   : > { %p1053_p10 = pnand %p1051_p9, %p1041_p8 }
  0x14   : > { %p1054_p11 = pneg %p1053_p10 }
  0x16   : > { %p1061_p2 = pnand %p1060_p0, %p1054_p11 }
  0x18   : > { %1064 = shalt.err (!%p1061_p2)
}
  0x19   : > { %s1134_s12 = smov 256   ;;  %s1135_s13 = smov 16  }
  0x1a   : > { %947 = dma.hbm_to_vmem [thread:$0]  (!%p1215_p7), %s1545_s2, 4864, %s200_s30, [#allocation5], %s1134_s12, %s1134_s12, %s1135_s13  }
  0x1b   : > { %p51_p3 = scmp.eq.s32.totalorder %s50_s10, 0  ;;  %p60_p6 = scmp.ne.s32.totalorder %s1127_s23, %s1123_s22 }
  0x1c   : > { %p61_p8 = scmp.eq.s32.totalorder %s1131_s24, 0  ;;  %p953_p9 = scmp.lt.s32.totalorder %s1131_s24, 2 }
  0x1d   : > { %s1240_s16 = scalar_select %p51_p3, %s1127_s23, %s53_s9  }
  0x1e   : > { %p62_p10 = por %p61_p8, %p60_p6  ;;  %s232_s17 = sand.u32 1, %s1127_s23  }
  0x1f   : > { %s898_s18 = sshll.u32 %s232_s17, 6  ;;  %s935_s19 = sshll.u32 %s1131_s24, 10 }
  0x20   : > { %s1247_s29 = scalar_lea.hbm %s1544_s1, %s935_s19  ;;  %s236_s7 = scalar_lea.vmem [#allocation2], %s898_s18 }
  0x21   : > { %s244_s30 = sshll.u32 %s236_s7, 4  ;;  %p1251_p7 = pnand %p953_p9, %p62_p10  ;;  %s1249_s30 = int_to_ptr.vmem [resolvable:$true] %s244_s30 }
  0x22   : > { %s1255_s9 = scalar_lea.sflag [#allocation3], %s232_s17  ;;  %s1065_s11 = scalar_lea.hbm %s1247_s29, 1024 }
  0x23   : > { %p1066_p11 = scmp.ne.s32.totalorder %s1247_s29, %s1065_s11  ;;  %p1067_p12 = pneg %p1251_p7 }
  0x24   : > { %s1070_s18 = scalar_lea.hbm %s1544_s1, 2048  ;;  %p1071_p2 = scmp.lt.s32.totalorder %s1247_s29, %s1544_s1 }
  0x25   : > { %p1068_p13 = pnand %p1067_p12, %p1066_p11  ;;  %p1072_p3 = scmp.lt.s32.totalorder %s1070_s18, %s1065_s11 }
  0x27   : > { %p1069_p0 = pneg %p1068_p13  ;;  %p1073_p6 = por %p1072_p3, %p1071_p2 }
  0x29   : > { %p1074_p8 = pnand %p1073_p6, %p1069_p0 }
  0x2b   : > { %1077 = shalt.err (!%p1074_p8)
}
  0x2c   : > { %s1078_s17 = scalar_lea.vmem %s1249_s30, 1024  ;;  %s1136_s21 = smov [#allocation2]  }
  0x2d   : > { %p1079_p9 = scmp.ne.s32.totalorder %s1249_s30, %s1078_s17  ;;  %s1083_s7 = sshll.u32 %s1136_s21, 4  ;;  %s1084_s7 = int_to_ptr.vmem [resolvable:$false] %s1083_s7 }
  0x2e   : > { %s1085_s14 = scalar_lea.vmem %s1084_s7, 2048  ;;  %p1086_p13 = scmp.lt.s32.totalorder %s1249_s30, %s1084_s7 }
  0x2f   : > { %p1081_p10 = pnand %p1079_p9, %p1067_p12  ;;  %p1087_p1 = scmp.lt.s32.totalorder %s1085_s14, %s1078_s17 }
  0x31   : > { %p1082_p11 = pneg %p1081_p10  ;;  %p1088_p4 = por %p1087_p1, %p1086_p13 }
  0x33   : > { %p1089_p5 = pnand %p1088_p4, %p1082_p11 }
  0x35   : > { %1092 = shalt.err (!%p1089_p5)
}
  0x36   : > { %951 = dma.hbm_to_vmem [thread:$0]  (!%p1251_p7), %s1247_s29, 1024, %s1249_s30, %s1255_s9, %s1134_s12, %s1134_s12, %s1135_s13  }
  0x37   : > { %p1559_p12 = scmp.ne.s32.totalorder %s1556_s28, 0 }
  0x38   : > { %s258_s11 = sand.u32 (!%p1559_p12), 1, %s1123_s22   ;;  %p1560_p1 = scmp.ne.s32.totalorder (!%p1559_p12), %s1555_s27, 0 }
  0x39   : > { %256 = sbr.rel (%p1559_p12) target bundleno = 500 (0x1f4), region = 44  ;;  %s903_s15 = sshll.u32 (!%p1559_p12), %s258_s11, 6 }
  0x3a   : > { %s259_s18 = scalar_lea.sflag (!%p1559_p12), [#allocation3], %s258_s11  ;;  %s1282_s19 = scalar_lea.vmem (!%p1559_p12), [#allocation2], %s903_s15 }
  0x3e   : > { %1110 = dma.done.wait (%p1560_p1), %s259_s18, 1024  }
  0x3f   : > { %1112 = vsyncadd (%p1560_p1), %s259_s18, 4294966272  ;;  %p1561_p4 = scmp.ne.s32.totalorder %s1554_s26, 0 }
  0x41   : > { %1114 = dma.done.wait (%p1561_p4), [#allocation5], 4864  }
  0x42   : > { %1116 = vsyncadd (%p1561_p4), [#allocation5], 4294962432  ;;  %v1137_v0 = vmov 0.0   ;;  %v576_v1 = vld [vmem:[%s1546_s3 + $0x78] sm:$0xff]  ;;  %v575_v2 = vld [vmem:[%s1546_s3 + $0x70] sm:$0xff]  ;;  %vm544_vm0 = vcmask 252928  }
  0x43   : > { %604 = vmatprep.subr.mxu1 %v1137_v0  ;;  %v574_v3 = vld [vmem:[%s1546_s3 + $0x68] sm:$0xff]  ;;  %v573_v4 = vld [vmem:[%s1546_s3 + $0x60] sm:$0xff]  ;;  %v356_v5 = vld [vmem:[#allocation4 + $0xf8] sm:$0xff]  ;;  %s905_s20 = sshll.u32 %s893_s25, 2  ;;  %vm600_vm1 = vcmask 1046528   ;;  %vm376_vm2 = vcmask 1045504  }
  0x44   : > { %605 = vmatpush1.msra.mxu1 %v576_v1  ;;  %v355_v6 = vld [vmem:[#allocation4 + $0xf0] sm:$0xff]  ;;  %v572_v7 = vld [vmem:[%s1546_s3 + $0x58] sm:$0xff]  ;;  %383 = vmatprep.subr.mxu0 %v356_v5  ;;  %v354_v8 = vld [vmem:[#allocation4 + $0xe8] sm:$0xff]  ;;  %p303_p5 = scmp.lt.s32.totalorder %s905_s20, 7  ;;  %vm363_vm3 = vcmask 179200   ;;  %vm772_vm6 = vcmask 130048  }
  0x45   : > { %606 = vmatprep.subr.mxu1 %v1137_v0  ;;  %v353_v9 = vld [vmem:[#allocation4 + $0xe0] sm:$0xff]  ;;  %384 = vmatpush1.msra.mxu0 %v355_v6  ;;  %v352_v10 = vld [vmem:[#allocation4 + $0xd8] sm:$0xff]  ;;  %v571_v11 = vld [vmem:[%s1546_s3 + $0x50] sm:$0xff]  ;;  %vm797_vm13 = vcmask 261368  }
  0x46   : > { %607 = vmatpush1.msra.mxu1 %v575_v2  ;;  %385 = vmatprep.subr.mxu0 %v354_v8  ;;  %v351_v12 = vld [vmem:[#allocation4 + $0xd0] sm:$0xff]  ;;  %v350_v13 = vld [vmem:[#allocation4 + $0xc8] sm:$0xff]  ;;  %v349_v15 = vld [vmem:[#allocation4 + $0xc0] sm:$0xff]  ;;  %s1567_s20 = smov (!%p303_p5, %s905_s20), 7 }
  0x47   : > { %608 = vmatprep.subr.mxu1 %v1137_v0  ;;  %386 = vmatpush1.msra.mxu0 %v353_v9  ;;  %v570_v14 = vld [vmem:[%s1546_s3 + $0x48] sm:$0xff]  ;;  %v348_v16 = vld [vmem:[#allocation4 + $0xb8] sm:$0xff]  ;;  %v569_v17 = vld [vmem:[%s1546_s3 + $0x40] sm:$0xff]  ;;  %s936_s12 = sshll.u32 %s1567_s20, 4 }
  0x48   : > { %609 = vmatpush1.msra.mxu1 %v574_v3  ;;  %387 = vmatprep.subr.mxu0 %v352_v10  ;;  %v347_v18 = vld [vmem:[#allocation4 + $0xb0] sm:$0xff]  ;;  %v1324_v19 = vld [vmem:[%s1282_s19 + $0x8] sm:$0xff]  ;;  %v568_v20 = vld [vmem:[%s1546_s3 + $0x38] sm:$0xff]  ;;  %s1387_s9 = scalar_lea.vmem %s1543_s0, %s936_s12  ;;  %s1476_s24 = scalar_lea.vmem %s1549_s6, %s936_s12 }
  0x49   : > { %610 = vmatprep.subr.mxu1 %v1137_v0  ;;  %388 = vmatpush1.msra.mxu0 %v351_v12  ;;  %v346_v21 = vld [vmem:[#allocation4 + $0xa8] sm:$0xff]  ;;  %v345_v22 = vld [vmem:[#allocation4 + $0xa0] sm:$0xff]  ;;  %v567_v23 = vld [vmem:[%s1546_s3 + $0x30] sm:$0xff] }
  0x4a   : > { %611 = vmatpush1.msra.mxu1 %v573_v4  ;;  %389 = vmatprep.subr.mxu0 %v350_v13  ;;  %v344_v24 = vld [vmem:[#allocation4 + $0x98] sm:$0xff]  ;;  %v343_v25 = vld [vmem:[#allocation4 + $0x90] sm:$0xff]  ;;  %v566_v26 = vld [vmem:[%s1546_s3 + $0x28] sm:$0xff] }
  0x4b   : > { %612 = vmatprep.subr.mxu1 %v1137_v0  ;;  %390 = vmatpush1.msra.mxu0 %v349_v15  ;;  %v342_v27 = vld [vmem:[#allocation4 + $0x88] sm:$0xff]  ;;  %v341_v28 = vld [vmem:[#allocation4 + $0x80] sm:$0xff]  ;;  %v340_v30 = vld [vmem:[#allocation4 + $0x78] sm:$0xff] }
  0x4c   : > { %613 = vmatpush1.msra.mxu1 %v572_v7  ;;  %391 = vmatprep.subr.mxu0 %v348_v16  ;;  %v565_v29 = vld [vmem:[%s1546_s3 + $0x20] sm:$0xff]  ;;  %v339_v31 = vld [vmem:[#allocation4 + $0x70] sm:$0xff]  ;;  %v564_v32 = vld [vmem:[%s1546_s3 + $0x18] sm:$0xff] }
  0x4d   : > { %614 = vmatprep.subr.mxu1 %v1137_v0  ;;  %392 = vmatpush1.msra.mxu0 %v347_v18  ;;  %v338_v33 = vld [vmem:[#allocation4 + $0x68] sm:$0xff]  ;;  %v337_v34 = vld [vmem:[#allocation4 + $0x60] sm:$0xff]  ;;  %v563_v35 = vld [vmem:[%s1546_s3 + $0x10] sm:$0xff] }
  0x4e   : > { %615 = vmatpush1.msra.mxu1 %v571_v11  ;;  %927 = vmatprep.mubr.msk.f32.mxu1 %vm544_vm0, %v1324_v19  ;;  %v336_v36 = vld [vmem:[#allocation4 + $0x58] sm:$0xff]  ;;  %v335_v37 = vld [vmem:[#allocation4 + $0x50] sm:$0xff]  ;;  %v562_v38 = vld [vmem:[%s1546_s3 + $0x8] sm:$0xff] }
  0x4f   : > { %616 = vmatprep.subr.mxu1 %v1137_v0  ;;  %393 = vmatprep.subr.mxu0 %v346_v21  ;;  %v334_v39 = vld [vmem:[#allocation4 + $0x48] sm:$0xff]  ;;  %v333_v40 = vld [vmem:[#allocation4 + $0x40] sm:$0xff]  ;;  %v332_v42 = vld [vmem:[#allocation4 + $0x38] sm:$0xff] }
  0x50   : > { %617 = vmatpush1.msra.mxu1 %v570_v14  ;;  %394 = vmatpush1.msra.mxu0 %v345_v22  ;;  %v561_v41 = vld [vmem:[%s1546_s3] sm:$0xff]  ;;  %v331_v43 = vld [vmem:[#allocation4 + $0x30] sm:$0xff]  ;;  %v580_v44 = vld [vmem:[%s1546_s3 + $0x98] sm:$0x7f] }
  0x51   : > { %618 = vmatprep.subr.mxu1 %v1137_v0  ;;  %395 = vmatprep.subr.mxu0 %v344_v24  ;;  %v330_v45 = vld [vmem:[#allocation4 + $0x28] sm:$0xff]  ;;  %v329_v46 = vld [vmem:[#allocation4 + $0x20] sm:$0xff]  ;;  %v579_v47 = vld [vmem:[%s1546_s3 + $0x90] sm:$0xff] }
  0x52   : > { %619 = vmatpush1.msra.mxu1 %v569_v17  ;;  %396 = vmatpush1.msra.mxu0 %v343_v25  ;;  %v328_v48 = vld [vmem:[#allocation4 + $0x18] sm:$0xff]  ;;  %v327_v49 = vld [vmem:[#allocation4 + $0x10] sm:$0xff]  ;;  %v578_v50 = vld [vmem:[%s1546_s3 + $0x88] sm:$0xff] }
  0x53   : > { %620 = vmatprep.subr.mxu1 %v1137_v0  ;;  %397 = vmatprep.subr.mxu0 %v342_v27  ;;  %v326_v51 = vld [vmem:[#allocation4 + $0x8] sm:$0xff]  ;;  %v325_v52 = vld [vmem:[#allocation4] sm:$0xff]  ;;  %v1394_v57 = vld [vmem:[%s1282_s19 + $0x18] sm:$0xff] }
  0x54   : > { %621 = vmatpush1.msra.mxu1 %v568_v20  ;;  %398 = vmatpush1.msra.mxu0 %v341_v28  ;;  %v577_v53 = vld [vmem:[%s1546_s3 + $0x80] sm:$0xff]  ;;  %v362_v54 = vld [vmem:[#allocation4 + $0x128] sm:$0x3f]  ;;  %v360_v58 = vld [vmem:[#allocation4 + $0x118] sm:$0xff] }
  0x55   : > { %622 = vmatprep.subr.mxu1 %v1137_v0  ;;  %399 = vmatprep.subr.mxu0 %v340_v30  ;;  %v1390_v55 = vld [vmem:[%s1282_s19] sm:$0xff]  ;;  %v359_v59 = vld [vmem:[#allocation4 + $0x110] sm:$0xff]  ;;  %v318_v60 = vld [vmem:[%s1387_s9 + $0x8] sm:$0xff] }
  0x56   : > { %623 = vmatpush1.msra.mxu1 %v567_v23  ;;  %400 = vmatpush1.msra.mxu0 %v339_v31  ;;  %v361_v56 = vld [vmem:[#allocation4 + $0x120] sm:$0x3f]  ;;  %v358_v61 = vld [vmem:[#allocation4 + $0x108] sm:$0xff]  ;;  %v474_v62 = vld [vmem:[%s1282_s19 + $0x10] sm:$0xff] }
  0x57   : > { %624 = vmatprep.subr.mxu1 %v1137_v0  ;;  %401 = vmatprep.subr.mxu0 %v338_v33  ;;  %v357_v63 = vld [vmem:[#allocation4 + $0x100] sm:$0xff]  ;;  %v320_v2 = vld [vmem:[%s1387_s9 + $0x18] sm:$0xff]  ;;  %v319_v5 = vld [vmem:[%s1387_s9 + $0x10] sm:$0xff] }
  0x58   : > { %625 = vmatpush1.msra.mxu1 %v566_v26  ;;  %402 = vmatpush1.msra.mxu0 %v337_v34  ;;  %v317_v1 = vld [vmem:[%s1387_s9] sm:$0xff]  ;;  %v1415_v4 = vld [vmem:[%s1282_s19 + $0x38] sm:$0xff]  ;;  %v322_v6 = vld [vmem:[%s1387_s9 + $0x28] sm:$0xff] }
  0x59   : > { %626 = vmatprep.subr.mxu1 %v1137_v0  ;;  %403 = vmatprep.subr.mxu0 %v336_v36  ;;  %v1412_v3 = vld [vmem:[%s1282_s19 + $0x20] sm:$0xff]  ;;  %v1424_v7 = vld [vmem:[%s1282_s19 + $0x30] sm:$0xff]  ;;  %v324_v9 = vld [vmem:[%s1387_s9 + $0x38] sm:$0xff] }
  0x5a   : > { %627 = vmatpush1.msra.mxu1 %v565_v29  ;;  %404 = vmatpush1.msra.mxu0 %v335_v37  ;;  %v321_v8 = vld [vmem:[%s1387_s9 + $0x20] sm:$0xff]  ;;  %v323_v10 = vld [vmem:[%s1387_s9 + $0x30] sm:$0xff] }
  0x5b   : > { %628 = vmatprep.subr.mxu1 %v1137_v0  ;;  %405 = vmatprep.subr.mxu0 %v334_v39  ;;  %v925_v11 = vld [vmem:[%s1547_s4] ss:$0 sm:$0xff] }
  0x5c   : > { %629 = vmatpush1.msra.mxu1 %v564_v32  ;;  %406 = vmatpush1.msra.mxu0 %v333_v40 }
  0x5d   : > { %630 = vmatprep.subr.mxu1 %v1137_v0  ;;  %407 = vmatprep.subr.mxu0 %v332_v42 }
  0x5e   : > { %631 = vmatpush1.msra.mxu1 %v563_v35  ;;  %408 = vmatpush1.msra.mxu0 %v331_v43 }
  0x5f   : > { %632 = vmatprep.subr.mxu1 %v1137_v0  ;;  %409 = vmatprep.subr.mxu0 %v330_v45 }
  0x60   : > { %633 = vmatpush1.msra.mxu1 %v562_v38  ;;  %410 = vmatpush1.msra.mxu0 %v329_v46 }
  0x61   : > { %634 = vmatprep.subr.mxu1 %v1137_v0  ;;  %411 = vmatprep.subr.mxu0 %v328_v48 }
  0x62   : > { %635 = vmatpush1.msra.mxu1 %v561_v41  ;;  %412 = vmatpush1.msra.mxu0 %v327_v49 }
  0x63   : > { %660 = vmatprep.subr.mxu1 %v1137_v0  ;;  %413 = vmatprep.subr.mxu0 %v326_v51 }
  0x64   : > { %926 = vmatpush2.msk.msra.mxu1 %vm600_vm1, %v580_v44  ;;  %414 = vmatpush1.msra.mxu0 %v325_v52 }
  0x65   : > { %662 = vmatprep.subr.mxu1 %v1137_v0  ;;  %911 = vmatprep.subr.msk.mxu0 %vm376_vm2, %v362_v54 }
  0x66   : > { %663 = vmatpush2.msra.mxu1 %v579_v47  ;;  %912 = vmatpush2.msk.msra.mxu0 %vm376_vm2, %v361_v56 }
  0x67   : > { %664 = vmatprep.subr.mxu1 %v1137_v0  ;;  %443 = vmatprep.subr.mxu0 %v360_v58 }
  0x68   : > { %665 = vmatpush2.msra.mxu1 %v578_v50  ;;  %444 = vmatpush2.msra.mxu0 %v359_v59 }
  0x69   : > { %666 = vmatprep.subr.mxu1 %v1137_v0  ;;  %v1404_v0 = vld [vmem:[%s1282_s19 + $0x28] sm:$0xff]  ;;  %913 = vmatprep.mubr.msk.f32.mxu0 %vm363_vm3, %v318_v60 }
  0x6a   : > { %667 = vmatpush2.msra.mxu1 %v577_v53  ;;  %445 = vmatprep.subr.mxu0 %v358_v61 }
  0x6b   : > { %669 = vmatmul.mubr.f32.vlgmr.msra.gmra.mxu1 %v1390_v55  ;;  %446 = vmatpush2.msra.mxu0 %v357_v63 }
  0x6c   : > { %928 = vmatprep.mubr.msk.f32.mxu1 %vm544_vm0, %v1394_v57  ;;  %448 = vmatmul.mubr.f32.vlgmr.msra.gmra.mxu0 %v317_v1 }
  0x6d   : > { %914 = vmatprep.mubr.msk.f32.mxu0 %vm363_vm3, %v320_v2 }
  0x6f   : > { %674 = vmatmul.mubr.f32.gmra.mxu1 %v474_v62 }
  0x70   : > { %929 = vmatprep.mubr.msk.f32.mxu1 %vm544_vm0, %v1404_v0  ;;  %454 = vmatmul.mubr.f32.gmra.mxu0 %v319_v5 }
  0x71   : > { %915 = vmatprep.mubr.msk.f32.mxu0 %vm363_vm3, %v322_v6 }
  0x73   : > { %679 = vmatmul.mubr.f32.gmra.mxu1 %v1412_v3 }
  0x74   : > { %930 = vmatprep.mubr.msk.f32.mxu1 %vm544_vm0, %v1415_v4  ;;  %460 = vmatmul.mubr.f32.gmra.mxu0 %v321_v8 }
  0x75   : > { %916 = vmatprep.mubr.msk.f32.mxu0 %vm363_vm3, %v324_v9 }
  0x77   : > { %684 = vmatmul.mubr.f32.gmra.mxu1 %v1424_v7 }
  0x78   : > { %466 = vmatmul.mubr.f32.gmra.mxu0 %v323_v10 }
 0x12b   : > { %v670_v12 = vpop.f32.mrf.mxu1 }
 0x12c   : > { %v1435_v13 = vadd.f32 %v925_v11, %v670_v12  ;;  %v449_v20 = vpop.f32.mrf.mxu0 }
 0x12d   : > { %v672_v14 = vpop.f32.mrf.mxu1  ;;  %v480_v22 = vsub.f32 0.0, %v449_v20  ;;  %v536_v32 = vmul.f32 %v1390_v55, %v449_v20 }
 0x12e   : > { %v701_v15 = vand.u32 2147483647, %v1435_v13  ;;  %v451_v25 = vpop.f32.mrf.mxu0  ;;  %vm693_vm5 = vcmp.ne.f32.partialorder %v1435_v13, %v1435_v13 }
 0x12f   : > { %v675_v16 = vpop.f32.mrf.mxu1  ;;  %v917_v27 = vmul.f32 -1.442695, %v480_v22  ;;  %v481_v28 = vsub.f32 0.0, %v451_v25  ;;  %v537_v29 = vmul.f32 %v1324_v19, %v451_v25 }
 0x130   : > { %v705_v17 = vsub.f32 0.0, %v701_v15  ;;  %v1438_v18 = vadd.f32 %v925_v11, %v675_v16  ;;  %v455_v33 = vpop.f32.mrf.mxu0 }
 0x131   : > { %v677_v21 = vpop.f32.mrf.mxu1  ;;  %v918_v35 = vmul.f32 -1.442695, %v481_v28  ;;  %v482_v36 = vsub.f32 0.0, %v455_v33  ;;  %v538_v39 = vmul.f32 %v474_v62, %v455_v33  ;;  %v545_v41 = vsel %vm544_vm0, %v537_v29, 0.0 }
 0x132   : > { %v709_v23 = vmul.f32 1.442695, %v705_v17  ;;  %v702_v24 = vand.u32 2147483647, %v1438_v18  ;;  %v457_v40 = vpop.f32.mrf.mxu0  ;;  %v546_v48 = vadd.f32 %v545_v41, %v536_v32  ;;  %vm694_vm8 = vcmp.ne.f32.partialorder %v1438_v18, %v1438_v18 }
 0x133   : > { %v680_v26 = vpop.f32.mrf.mxu1  ;;  %v919_v19 = vmul.f32 -1.442695, %v482_v36  ;;  %v483_v43 = vsub.f32 0.0, %v457_v40  ;;  %v539_v44 = vmul.f32 %v1394_v57, %v457_v40 }
 0x134   : > { %991 = vpow2.f32 %v709_v23  ;;  %v706_v30 = vsub.f32 0.0, %v702_v24  ;;  %v1442_v31 = vadd.f32 %v925_v11, %v680_v26  ;;  %v461_v47 = vpop.f32.mrf.mxu0  ;;  %547 = vadd.xlane.f32.xlu0 %v546_v48  ;;  %v689_v48 = vmax.f32 %v1435_v13, 0.0 }
 0x135   : > { %v682_v34 = vpop.f32.mrf.mxu1  ;;  %993 = vpow2.f32 %v917_v27  ;;  %v920_v50 = vmul.f32 -1.442695, %v483_v43  ;;  %v484_v51 = vsub.f32 0.0, %v461_v47  ;;  %v540_v54 = vmul.f32 %v1412_v3, %v461_v47 }
 0x136   : > { %v711_v37 = vmul.f32 1.442695, %v706_v30  ;;  %v703_v38 = vand.u32 2147483647, %v1442_v31  ;;  %995 = vpow2.f32 %v918_v35  ;;  %v463_v55 = vpop.f32.mrf.mxu0  ;;  %v549_v56 = vsel %vm544_vm0, %v539_v44, 0.0 }
 0x137   : > { %v685_v42 = vpop.f32.mrf.mxu1  ;;  %v921_v57 = vmul.f32 -1.442695, %v484_v51  ;;  %v485_v58 = vsub.f32 0.0, %v463_v55  ;;  %v541_v59 = vmul.f32 %v1404_v0, %v463_v55  ;;  %v550_v61 = vadd.f32 %v549_v56, %v538_v39  ;;  %v931_v56 = vld [vmem:[%s1548_s5] ss:$0 sm:$0xff] }
 0x138   : > { %997 = vpow2.f32 %v711_v37  ;;  %v707_v45 = vsub.f32 0.0, %v703_v38  ;;  %v1448_v46 = vadd.f32 %v925_v11, %v685_v42  ;;  %v1454_v62 = vpop.f32.mrf.mxu0  ;;  %vm695_vm10 = vcmp.ne.f32.partialorder %v1442_v31, %v1442_v31 }
 0x139   : > { %v687_v49 = vpop.f32.mrf.mxu1  ;;  %999 = vpow2.f32 %v919_v19  ;;  %v922_v63 = vmul.f32 -1.442695, %v485_v58  ;;  %v553_v1 = vsel %vm544_vm0, %v541_v59, 0.0  ;;  %v486_v2 = vsub.f32 0.0, %v1454_v62  ;;  %551 = vadd.xlane.f32.xlu1 %v550_v61 }
 0x13a   : > { %v713_v52 = vmul.f32 1.442695, %v707_v45  ;;  %v704_v53 = vand.u32 2147483647, %v1448_v46  ;;  %1001 = vpow2.f32 %v920_v50  ;;  %v554_v5 = vadd.f32 %v553_v1, %v540_v54  ;;  %v1458_v6 = vpop.f32.mrf.mxu0 }
 0x13b   : > { %v923_v8 = vmul.f32 -1.442695, %v486_v2  ;;  %v487_v0 = vsub.f32 0.0, %v1458_v6  ;;  %v690_v54 = vmax.f32 %v1438_v18, 0.0  ;;  %vm696_vm12 = vcmp.ne.f32.partialorder %v1448_v46, %v1448_v46 }
 0x13c   : > { %1003 = vpow2.f32 %v713_v52  ;;  %v708_v60 = vsub.f32 0.0, %v704_v53  ;;  %555 = vadd.xlane.f32.xlu0 %v554_v5  ;;  %v543_v52 = vmul.f32 %v1415_v4, %v1458_v6 }
 0x13d   : > { %1005 = vpow2.f32 %v921_v57  ;;  %v924_v10 = vmul.f32 -1.442695, %v487_v0  ;;  %v691_v0 = vmax.f32 %v1442_v31, 0.0 }
 0x13e   : > { %v715_v3 = vmul.f32 1.442695, %v708_v60  ;;  %1007 = vpow2.f32 %v922_v63  ;;  %v542_v63 = vmul.f32 %v1424_v7, %v1454_v62  ;;  %v557_v6 = vsel %vm544_vm0, %v543_v52, 0.0 }
 0x140   : > { %1009 = vpow2.f32 %v715_v3 }
 0x141   : > { %v992_v9 = vpop.eup %991  ;;  %1011 = vpow2.f32 %v923_v8 }
 0x142   : > { %v994_v11 = vpop.eup %993  ;;  %v717_v12 = vadd.f32 1.0, %v992_v9  ;;  %1013 = vpow2.f32 %v924_v10  ;;  %v720_v27 = vmul.f32 -0.5, %v992_v9  ;;  %v723_v38 = vand.u32 2147483647, %v992_v9 }
 0x143   : > { %v512_v14 = vadd.f32 1.0, %v994_v11  ;;  %v996_v15 = vpop.eup %995 }
 0x144   : > { %1015 = vlog2.f32 %v717_v12  ;;  %v513_v17 = vadd.f32 1.0, %v996_v15  ;;  %v721_v35 = vadd.f32 1.0, %v720_v27  ;;  %vm724_vm4 = vcmp.lt.f32.partialorder %v723_v38, 0.0004427343 }
 0x145   : > { %v1461_v16 = vpop.eup %997  ;;  %1017 = vrcp.f32 %v512_v14  ;;  %v558_v14 = vadd.f32 %v557_v6, %v542_v63 }
 0x146   : > { %v1000_v20 = vpop.eup %999  ;;  %v726_v21 = vadd.f32 1.0, %v1461_v16  ;;  %1019 = vrcp.f32 %v513_v17  ;;  %v729_v36 = vmul.f32 -0.5, %v1461_v16  ;;  %v722_v44 = vmul.f32 %v992_v9, %v721_v35 }
 0x147   : > { %v514_v22 = vadd.f32 1.0, %v1000_v20  ;;  %v1002_v23 = vpop.eup %1001  ;;  %v732_v49 = vand.u32 2147483647, %v1461_v16 }
 0x148   : > { %1021 = vlog2.f32 %v726_v21  ;;  %v515_v25 = vadd.f32 1.0, %v1002_v23  ;;  %v730_v45 = vadd.f32 1.0, %v729_v36 }
 0x149   : > { %v1464_v24 = vpop.eup %1003  ;;  %1023 = vrcp.f32 %v514_v22  ;;  %vm733_vm7 = vcmp.lt.f32.partialorder %v732_v49, 0.0004427343 }
 0x14a   : > { %v1006_v26 = vpop.eup %1005  ;;  %v735_v28 = vadd.f32 1.0, %v1464_v24  ;;  %1025 = vrcp.f32 %v515_v25  ;;  %v738_v47 = vmul.f32 -0.5, %v1464_v24  ;;  %v731_v59 = vmul.f32 %v1461_v16, %v730_v45 }
 0x14b   : > { %v516_v29 = vadd.f32 1.0, %v1006_v26  ;;  %v1008_v30 = vpop.eup %1007  ;;  %v741_v1 = vand.u32 2147483647, %v1464_v24  ;;  %v692_v26 = vmax.f32 %v1448_v46, 0.0 }
 0x14c   : > { %1027 = vlog2.f32 %v735_v28  ;;  %v517_v33 = vadd.f32 1.0, %v1008_v30  ;;  %v739_v4 = vadd.f32 1.0, %v738_v47 }
 0x14d   : > { %v1467_v32 = vpop.eup %1009  ;;  %1029 = vrcp.f32 %v516_v29  ;;  %vm742_vm9 = vcmp.lt.f32.partialorder %v741_v1, 0.0004427343 }
 0x14e   : > { %v1012_v34 = vpop.eup %1011  ;;  %v744_v37 = vadd.f32 1.0, %v1467_v32  ;;  %1031 = vrcp.f32 %v517_v33  ;;  %v747_v60 = vmul.f32 -0.5, %v1467_v32  ;;  %v740_v10 = vmul.f32 %v1464_v24, %v739_v4 }
 0x14f   : > { %v518_v39 = vadd.f32 1.0, %v1012_v34  ;;  %v1014_v40 = vpop.eup %1013  ;;  %v750_v15 = vand.u32 2147483647, %v1467_v32 }
 0x150   : > { %1033 = vlog2.f32 %v744_v37  ;;  %v519_v42 = vadd.f32 1.0, %v1014_v40  ;;  %v748_v11 = vadd.f32 1.0, %v747_v60 }
 0x151   : > { %v1016_v41 = vpop.eup %1015  ;;  %1035 = vrcp.f32 %v518_v39  ;;  %vm751_vm11 = vcmp.lt.f32.partialorder %v750_v15, 0.0004427343 }
 0x152   : > { %v1018_v19 = vpop.eup %1017  ;;  %v719_v43 = vmul.f32 0.6931472, %v1016_v41  ;;  %1037 = vrcp.f32 %v519_v42  ;;  %v749_v25 = vmul.f32 %v1467_v32, %v748_v11 }
 0x153   : > { %789 = vst [vmem:[%s1476_s24] sm:$0xff] %v1018_v19  ;;  %v1020_v50 = vpop.eup %1019 }
 0x154   : > { %v725_v51 = vsel %vm724_vm4, %v722_v44, %v719_v43  ;;  %790 = vst.msk [vmem:[%s1476_s24 + $0x8] sm:$0xff] %vm544_vm0, %v1020_v50 }
 0x155   : > { %v1022_v53 = vpop.eup %1021  ;;  %v753_v55 = vadd.f32 %v725_v51, %v689_v48 }
 0x156   : > { %v1024_v57 = vpop.eup %1023  ;;  %v728_v58 = vmul.f32 0.6931472, %v1022_v53 }
 0x157   : > { %791 = vst [vmem:[%s1476_s24 + $0x10] sm:$0xff] %v1024_v57  ;;  %v757_v61 = vsel %vm693_vm5, %v1435_v13, %v753_v55  ;;  %v1026_v2 = vpop.eup %1025 }
 0x158   : > { %v768_v3 = vmul.f32 %v931_v56, %v757_v61  ;;  %v734_v5 = vsel %vm733_vm7, %v731_v59, %v728_v58  ;;  %792 = vst.msk [vmem:[%s1476_s24 + $0x18] sm:$0xff] %vm544_vm0, %v1026_v2 }
 0x159   : > { %v1028_v8 = vpop.eup %1027  ;;  %v754_v13 = vadd.f32 %v734_v5, %v690_v54 }
 0x15a   : > { %v1030_v7 = vpop.eup %1029  ;;  %v773_v62 = vsel %vm772_vm6, %v768_v3, 0.0  ;;  %v737_v9 = vmul.f32 0.6931472, %v1028_v8 }
 0x15b   : > { %793 = vst [vmem:[%s1476_s24 + $0x20] sm:$0xff] %v1030_v7  ;;  %774 = vadd.xlane.f32.xlu0 %v773_v62  ;;  %v758_v12 = vsel %vm694_vm8, %v1438_v18, %v754_v13  ;;  %v1032_v16 = vpop.eup %1031 }
 0x15c   : > { %v769_v17 = vmul.f32 %v931_v56, %v758_v12  ;;  %v743_v20 = vsel %vm742_vm9, %v740_v10, %v737_v9  ;;  %794 = vst.msk [vmem:[%s1476_s24 + $0x28] sm:$0xff] %vm544_vm0, %v1032_v16 }
 0x15d   : > { %v1034_v21 = vpop.eup %1033  ;;  %v755_v22 = vadd.f32 %v743_v20, %v691_v0 }
 0x15e   : > { %v1036_v23 = vpop.eup %1035  ;;  %v776_v24 = vsel %vm772_vm6, %v769_v17, 0.0  ;;  %v746_v18 = vmul.f32 0.6931472, %v1034_v21 }
 0x15f   : > { %795 = vst [vmem:[%s1476_s24 + $0x30] sm:$0xff] %v1036_v23  ;;  %777 = vadd.xlane.f32.xlu1 %v776_v24  ;;  %v759_v27 = vsel %vm695_vm10, %v1442_v31, %v755_v22  ;;  %559 = vadd.xlane.f32.xlu0 %v558_v14  ;;  %v1038_v28 = vpop.eup %1037 }
 0x160   : > { %v770_v29 = vmul.f32 %v931_v56, %v759_v27  ;;  %v752_v30 = vsel %vm751_vm11, %v749_v25, %v746_v18  ;;  %796 = vst.msk [vmem:[%s1476_s24 + $0x38] sm:$0xff] %vm544_vm0, %v1038_v28 }
 0x161   : > { %v756_v33 = vadd.f32 %v752_v30, %v692_v26 }
 0x162   : > { %v779_v34 = vsel %vm772_vm6, %v770_v29, 0.0 }
 0x163   : > { %780 = vadd.xlane.f32.xlu1 %v779_v34  ;;  %v760_v32 = vsel %vm696_vm12, %v1448_v46, %v756_v33 }
 0x164   : > { %v771_v31 = vmul.f32 %v931_v56, %v760_v32 }
 0x166   : > { %v782_v35 = vsel %vm772_vm6, %v771_v31, 0.0 }
 0x167   : > { %783 = vadd.xlane.f32.xlu1 %v782_v35 }
 0x1bd   : > { %v548_v36 = vpop.xlane.xlu0 %547 }
 0x1c2   : > { %v552_v38 = vpop.xlane.xlu1 %551 }
 0x1c5   : > { %v556_v37 = vpop.xlane.xlu0 %555 }
 0x1e4   : > { %v775_v39 = vpop.xlane.xlu0 %774 }
 0x1e5   : > { %v785_v40 = vadd.f32 %v775_v39, %v548_v36 }
 0x1e7   : > { %798 = vst.msk [vmem:[%s1476_s24 + $0x8] sm:$0xff] %vm797_vm13, %v785_v40 }
 0x1e8   : > { %v778_v41 = vpop.xlane.xlu1 %777  ;;  %v560_v46 = vpop.xlane.xlu0 %559 }
 0x1e9   : > { %v786_v42 = vadd.f32 %v778_v41, %v552_v38 }
 0x1eb   : > { %799 = vst.msk [vmem:[%s1476_s24 + $0x18] sm:$0xff] %vm797_vm13, %v786_v42 }
 0x1ec   : > { %v781_v19 = vpop.xlane.xlu1 %780 }
 0x1ed   : > { %v787_v43 = vadd.f32 %v781_v19, %v556_v37 }
 0x1ef   : > { %800 = vst.msk [vmem:[%s1476_s24 + $0x28] sm:$0xff] %vm797_vm13, %v787_v43 }
 0x1f0   : > { %v784_v44 = vpop.xlane.xlu1 %783 }
 0x1f1   : > { %v788_v45 = vadd.f32 %v784_v44, %v560_v46 }
 0x1f3   : > { %801 = vst.msk [vmem:[%s1476_s24 + $0x38] sm:$0xff] %vm797_vm13, %v788_v45 }
 0x1f4 PF: > { %p17_p7 = scmp.ge.s32.totalorder %s1220_s8, 4   ;;  %s1562_s21 = smov %s1123_s22 }
 0x1f5   : > { %s1563_s22 = smov %s1127_s23  ;;  %s1564_s23 = smov %s1240_s16 }
 0x1f6   : > { %s1565_s24 = smov %s1220_s8  ;;  %19 = sbr.rel (!%p17_p7) target bundleno = 4 (0x4), region = 91 }
 0x1fb   :  { %826 = vsyncpa [#allocation3], 1 }
 0x1fc   :  { %828 = vsyncpa [#allocation3 + $0x1], 1 }
 0x1fd   :  { %829 = vsyncpa [#allocation5], 1 }

</bundles_post_ra>
